<compile_context>
chip_gen: v7x
topology: tpu7x:2x2x1
jax: 0.10.0
libtpu: 0.0.40
codegen_flags: <defaults>
</compile_context>

<pallas_src>
import jax
import jax.numpy as jnp
from jax.experimental import pallas as pl
from jax.experimental.pallas import tpu as pltpu

_LANE = 128
_SUBLANE = 8
_T_TILE_CAP = 2048                       # sweepable; good on v5e/v6e/v7x
_VMEM_BUDGET = 36 * 1024 * 1024          # working-set budget used by the tile picker
_VMEM_LIMIT = 48 * 1024 * 1024           # safe on all gens (v7x physical = 64 MiB)


def _round_up(x, m):
    return ((x + m - 1) // m) * m


def _pick_t_tile(n_dim_pad, n_rows, n_time):
    """Largest lane-multiple T tile whose pipelined working set fits the budget."""
    t = min(_round_up(max(n_time, 1), _LANE), _T_TILE_CAP)

    def fits(tt):
        # out double-buffered + H (up to) triple-buffered + W double-buffered, f32
        return (2 * n_dim_pad * tt + 3 * n_rows * tt + 2 * n_dim_pad * n_rows) * 4 \
            <= _VMEM_BUDGET

    while t > _LANE and not fits(t):
        t -= _LANE
    return t


def _flownmf2_kernel(w_ref, h_ref, o_ref):
    # w_ref : (Dp, S*K)  relu'd decode output, grid-invariant (fetched once)
    # h_ref : (S*K, tT)  raw activations for the current T tile
    # o_ref : (Dp, tT)   output tile (lane-dense, written once)
    h = jnp.maximum(h_ref[...], 0.0)                          # relu(H) on the VPU
    o_ref[...] = jnp.dot(w_ref[...], h,
                         preferred_element_type=jnp.float32).astype(o_ref.dtype)


def flownmf2_forward(Z, A, b, H, *, out_dtype=jnp.float32):
    """Z:(S,D,K) A:(S,D,D) b:(S,D,1) H:(S,K,T) -> (D,T)."""
    n_sources, n_dim, n_cps = Z.shape
    n_time = H.shape[-1]
    sk = n_sources * n_cps

    # --- wrapper-side decode (plain XLA, tiny: D x S*K) ----------------------
    # decode(Z_k.T).T with an affine flow == A_k @ Z_k + b_k ; relu ; cat(dim=1).
    w = jnp.maximum(jnp.einsum("sij,sjk->sik", A, Z) + b, 0.0)   # (S, D, K)
    w = jnp.transpose(w, (1, 0, 2)).reshape(n_dim, sk)           # (D, S*K)

    # Pad output rows to a sublane multiple so output stores stay unmasked.
    d_pad = _round_up(n_dim, _SUBLANE)
    if d_pad != n_dim:
        w = jnp.pad(w, ((0, d_pad - n_dim), (0, 0)))

    # Pack H sources along rows (== torch.cat(H_k, dim=0)); pad T so every
    # store is lane-dense (multiple of 128 lanes). relu(0) = 0 -> padding inert.
    h_packed = H.reshape(sk, n_time)
    t_tile = _pick_t_tile(d_pad, sk, n_time)
    t_pad = _round_up(n_time, t_tile)
    if t_pad != n_time:
        h_packed = jnp.pad(h_packed, ((0, 0), (0, t_pad - n_time)))

    grid_steps = t_pad // t_tile

    # Grid-invariant W: constant index_map, fetched once and kept resident.
    w_spec = pl.BlockSpec((d_pad, sk), lambda t: (0, 0))
    # H streams over T; deepen pipelining when there are enough steps to hide
    # DMA latency behind the (tiny) per-tile compute.
    if grid_steps >= 3:
        try:
            h_spec = pl.BlockSpec((sk, t_tile), lambda t: (0, t),
                                  pipeline_mode=pl.Buffered(3))
        except TypeError:  # older BlockSpec without pipeline_mode
            h_spec = pl.BlockSpec((sk, t_tile), lambda t: (0, t))
    else:
        h_spec = pl.BlockSpec((sk, t_tile), lambda t: (0, t))
    o_spec = pl.BlockSpec((d_pad, t_tile), lambda t: (0, t))

    itemsize = 4
    cost = pl.CostEstimate(
        flops=2 * d_pad * sk * t_pad,
        transcendentals=0,
        bytes_accessed=(d_pad * sk + sk * t_pad + d_pad * t_pad) * itemsize,
    )

    out = pl.pallas_call(
        _flownmf2_kernel,
        out_shape=jax.ShapeDtypeStruct((d_pad, t_pad), out_dtype),
        grid_spec=pltpu.PrefetchScalarGridSpec(
            num_scalar_prefetch=0,
            grid=(grid_steps,),
            in_specs=[w_spec, h_spec],
            out_specs=o_spec,
        ),
        compiler_params=pltpu.CompilerParams(
            dimension_semantics=("parallel",),   # T tiles shard over TCs on v7x
            vmem_limit_bytes=_VMEM_LIMIT,
        ),
        cost_estimate=cost,
    )(w, h_packed)

    return out[:n_dim, :n_time]


def flownmf2_forward_ref(Z, A, b, H):
    """Plain-JAX reference mirroring the PyTorch forward."""
    Ws = [jnp.maximum(A[s] @ Z[s] + b[s], 0.0) for s in range(Z.shape[0])]
    Hs = [jnp.maximum(H[s], 0.0) for s in range(H.shape[0])]
    W = jnp.concatenate(Ws, axis=1)
    Hc = jnp.concatenate(Hs, axis=0)
    return W @ Hc


if __name__ == "__main__":
    # Small shapes consistent with the module's __init__:
    n_sources = 2          # len(flows_dict)
    n_dim = 32             # S.shape[0]
    n_time = 16            # S.shape[1]
    n_cps = 8              # n_comps_per_source

    key = jax.random.PRNGKey(0)
    k_s, k_z, k_a, k_b, k_h = jax.random.split(key, 5)

    # S buffer (spectrogram-like, non-negative) — only its mean feeds H init.
    S = jax.random.uniform(k_s, (n_dim, n_time), dtype=jnp.float32)

    # Z_init='random': prior sample (standard normal), shape (n_cps, n_dim).T
    Z = jax.random.normal(k_z, (n_sources, n_dim, n_cps), dtype=jnp.float32)

    # Synthetic per-source affine flow decode params (deterministic init).
    A = jax.random.normal(k_a, (n_sources, n_dim, n_dim), dtype=jnp.float32) * 0.1 \
        + jnp.eye(n_dim, dtype=jnp.float32)[None]
    b = jax.random.normal(k_b, (n_sources, n_dim, 1), dtype=jnp.float32) * 0.1

    # H_init='random': rand * sqrt(S.mean() / (n_sources * n_cps))
    h_scale = jnp.sqrt(S.mean() / (n_sources * n_cps))
    H = jax.random.uniform(k_h, (n_sources, n_cps, n_time), dtype=jnp.float32) * h_scale

    out = flownmf2_forward(Z, A, b, H)           # f32 path (exact vs ref)
    jax.block_until_ready(out)

    ref = flownmf2_forward_ref(Z, A, b, H)
    assert out.shape == (n_dim, n_time)
    assert jnp.allclose(out, ref, atol=1e-4, rtol=1e-4)

    print("KERNEL_OK")
</pallas_src>

<mosaic_0001>
module attributes {stable_mosaic.version = 11 : i64} {
  func.func @_flownmf2_kernel(%arg0: i32, %arg1: memref<32x16xf32, #tpu.memory_space<vmem>>, %arg2: memref<16x128xf32, #tpu.memory_space<vmem>>, %arg3: memref<32x128xf32, #tpu.memory_space<vmem>>) attributes {dimension_semantics = [#tpu.dimension_semantics<parallel>], iteration_bounds = array<i64: 1>, scalar_prefetch = 0 : i64, scratch_operands = 0 : i64, tpu.core_type = #tpu.core_type<tc>, window_params = [{pipeline_mode = #tpu.pipeline_mode<synchronous>, transform_indices = @transform_0, window_bounds = array<i64: 32, 16>}, {transform_indices = @transform_1, window_bounds = array<i64: 16, 128>}, {transform_indices = @transform_2, window_bounds = array<i64: 32, 128>}]} {
    %c0 = arith.constant 0 : index
    %c0_0 = arith.constant 0 : index
    %0 = vector.load %arg2[%c0, %c0_0] : memref<16x128xf32, #tpu.memory_space<vmem>>, vector<16x128xf32>
    %cst = arith.constant 0.000000e+00 : f32
    %1 = vector.broadcast %cst : f32 to vector<16x128xf32>
    %2 = arith.maximumf %0, %1 : vector<16x128xf32>
    %c0_1 = arith.constant 0 : index
    %c0_2 = arith.constant 0 : index
    %3 = vector.load %arg1[%c0_1, %c0_2] : memref<32x16xf32, #tpu.memory_space<vmem>>, vector<32x16xf32>
    %cst_3 = arith.constant dense<0.000000e+00> : vector<32x128xf32>
    %4 = tpu.matmul %3, %2, %cst_3 {dimension_numbers = #tpu.dot_dimension_numbers<[1], [0], [0], [1], [0, 0, 1, 1], [], []>} : vector<32x16xf32>, vector<16x128xf32>, vector<32x128xf32> -> vector<32x128xf32>
    %c0_4 = arith.constant 0 : index
    %c0_5 = arith.constant 0 : index
    %5 = vector.load %arg3[%c0_4, %c0_5] : memref<32x128xf32, #tpu.memory_space<vmem>>, vector<32x128xf32>
    tpu.vector_store %arg3[%c0_4, %c0_5], %4 {strides = array<i32>} : memref<32x128xf32, #tpu.memory_space<vmem>>, vector<32x128xf32>,
    return
  }
  func.func @transform_0(%arg0: i32) -> (i32, i32) {
    %c0_i32 = arith.constant 0 : i32
    %c0_i32_0 = arith.constant 0 : i32
    %c0_i32_1 = arith.constant 0 : i32
    return %c0_i32, %c0_i32_0 : i32, i32
  }
  func.func @transform_1(%arg0: i32) -> (i32, i32) {
    %c0_i32 = arith.constant 0 : i32
    %c0_i32_0 = arith.constant 0 : i32
    return %c0_i32, %arg0 : i32, i32
  }
  func.func @transform_2(%arg0: i32) -> (i32, i32) {
    %c0_i32 = arith.constant 0 : i32
    %c0_i32_0 = arith.constant 0 : i32
    return %c0_i32, %arg0 : i32, i32
  }
}

</mosaic_0001>

<bundles_post_ra>
// kernel: tpu_custom_call.1
= control target key start
LH: loop header
LB: loop body
LE: loop exit
PB: predicated region body
PF: predicated region fallthrough
CT: control target
= control target key end

     0   :  { %vm20_vm0 = vcmask 130048   ;;  %s239_s0 = inlined_call_operand.vmem [shape: f32[32,16], index: 0, kind: input, shape index: {}]   ;;  %s240_s1 = inlined_call_operand.vmem [shape: f32[16,128], index: 1, kind: input, shape index: {}]   ;;  %s241_s2 = inlined_call_operand.hbm [shape: f32[32,128], index: 2, kind: output, shape index: {}]  }
   0x1   :  { %v12_v0 = vld [vmem:[%s240_s1] sm:$0xff]  ;;  %v13_v1 = vld [vmem:[%s240_s1 + $0x8] sm:$0xff]  ;;  %v18_v5 = vld [vmem:[%s239_s0 + $0x10] sm:$0xff] }
   0x2   :  { %v16_v2 = vld [vmem:[%s239_s0] sm:$0xff]  ;;  %v14_v3 = vmax.f32 %v12_v0, 0.0  ;;  %v15_v4 = vmax.f32 %v13_v1, 0.0  ;;  %155 = vmatprep.mubr.msk.f32.mxu1 %vm20_vm0, %v18_v5 }
   0x3   :  { %152 = vmatprep.mubr.msk.f32.mxu0 %vm20_vm0, %v16_v2 }
   0x4   :  { %7 = vsyncpa [#allocation3], 0  ;;  %v158_v6 = vpack.c.bf16 %v15_v4, %v14_v3  ;;  %v17_v7 = vld [vmem:[%s239_s0 + $0x8] sm:$0xff]  ;;  %v19_v8 = vld [vmem:[%s239_s0 + $0x18] sm:$0xff]  ;;  %s191_s20 = smov [#allocation2]  }
   0x5   :  { %s127_s21 = sshll.u32 %s191_s20, 4  ;;  %s128_s21 = int_to_ptr.vmem [resolvable:$true] %s127_s21 }
   0x6   :  { %159 = vmatprep.subr.bf16.mxu0 %v158_v6  ;;  %162 = vmatprep.subr.bf16.mxu1 %v158_v6  ;;  %s167_s22 = scalar_lea.vmem %s128_s21, 512  ;;  %p172_p1 = scmp.lt.s32.totalorder %s128_s21, %s128_s21 }
   0x7   :  { %161 = vmatpush3.bf16.msra.mxu0 %v158_v6  ;;  %163 = vmatpush3.bf16.msra.mxu1 %v158_v6  ;;  %p168_p0 = scmp.ne.s32.totalorder %s128_s21, %s167_s22  ;;  %p173_p2 = scmp.lt.s32.totalorder %s167_s22, %s167_s22 }
   0x9   :  { %p174_p3 = por %p173_p2, %p172_p1 }
   0xa   :  { %153 = vmatmul.mubr.msk.f32.vlgmr.msra.gmra.mrb[0].mxu0 %vm20_vm0, %v17_v7  ;;  %156 = vmatmul.mubr.msk.f32.vlgmr.msra.gmra.mrb[0].mxu1 %vm20_vm0, %v19_v8 }
   0xb   :  { %p175_p4 = pnand %p174_p3, %p168_p0 }
  0xdd   :  { %v154_v9 = vpop.f32.mrb[0].mxu0  ;;  %v157_v10 = vpop.f32.mrb[0].mxu1 }
  0xde   :  { %119 = vst [vmem:[#allocation2 + $0x8] sm:$0xff] %v154_v9  ;;  %121 = vst [vmem:[#allocation2 + $0x18] sm:$0xff] %v157_v10  ;;  %v99_v11 = vpop.f32.mrb[1].mxu0  ;;  %v109_v12 = vpop.f32.mrb[1].mxu1 }
  0xdf   :  { %118 = vst [vmem:[#allocation2] sm:$0xff] %v99_v11  ;;  %120 = vst [vmem:[#allocation2 + $0x10] sm:$0xff] %v109_v12 }
  0xe0   :  { %178 = shalt.err (!%p175_p4)
}
  0xe1   :  { %s179_s24 = scalar_lea.hbm %s241_s2, 512 }
  0xe2   :  { %p180_p5 = scmp.ne.s32.totalorder %s241_s2, %s179_s24  ;;  %p183_p6 = scmp.lt.u32.totalorder %s179_s24, %s241_s2 }
  0xe4   :  { %p185_p7 = pnand %p183_p6, %p180_p5 }
  0xe6   :  { %188 = shalt.err (!%p185_p7)
}
  0xe7   :  { %s192_s29 = smov 128   ;;  %s193_s30 = smov 8  }
  0xe8   :  { %133 = dma.vmem_to_hbm [thread:$0]  %s128_s21, 512, %s241_s2, [#allocation3], %s192_s29, %s192_s29, %s193_s30  }
  0xe9   :  { %189 = dma.done.wait [#allocation3], 512  }
  0xea   :  { %190 = vsyncadd [#allocation3], 4294966784 }
  0xeb   :  { %137 = vsyncpa [#allocation3], 1 }

</bundles_post_ra>
